<compile_context>
chip_gen: v7x
topology: tpu7x:2x2x1
jax: 0.10.0
libtpu: 0.0.40
codegen_flags: <defaults>
</compile_context>

<pallas_src>
import jax
import jax.numpy as jnp
from jax.experimental import pallas as pl
from jax.experimental.pallas import tpu as pltpu


def _round_up(x: int, m: int) -> int:
    return ((x + m - 1) // m) * m


def dot_product_kernel(text_ref, vision_ref, wt_ref, bt_ref, wv_ref, bv_ref, out_ref):
    # text tile:   [tm, T] @ wt [T, E]  (f32 accumulate)  + bt [1, E]
    # vision tile: [tm, V] @ wv [V, E]  (f32 accumulate)  + bv [1, E]
    # Epilogue (bias add + elementwise product) stays f32; only the final store casts.
    t = text_ref[...].astype(wt_ref.dtype)      # no-op when dtypes already match
    v = vision_ref[...].astype(wv_ref.dtype)
    t_emb = jnp.dot(t, wt_ref[...], preferred_element_type=jnp.float32) + bt_ref[...]
    v_emb = jnp.dot(v, wv_ref[...], preferred_element_type=jnp.float32) + bv_ref[...]
    out_ref[...] = (t_emb * v_emb).astype(out_ref.dtype)


def dot_product_forward(text, vision, wt, bt, wv, bv, *,
                        block_b: int = 512, matmul_dtype=None):
    """text: [B, T]; vision: [B, C, H, W]; wt: [T, E]; bt: [E]; wv: [V, E]; bv: [E].

    block_b: max batch tile (mem-bound kernel -> bigger is better until VMEM).
    matmul_dtype: e.g. jnp.bfloat16 -> weights cast in the wrapper (resident, one-time
      DMA) and activation tiles cast in-kernel; accumulation / epilogue stay f32.
    """
    B = vision.shape[0]
    vision_flat = vision.reshape(B, -1)          # glue: same as torch .view(B, -1)
    T = text.shape[1]
    V = vision_flat.shape[1]
    E = wt.shape[1]
    out_dtype = text.dtype

    # Only resident weights are cast in the wrapper; activations are cast in-kernel.
    if matmul_dtype is not None:
        wt = wt.astype(matmul_dtype)
        wv = wv.astype(matmul_dtype)

    # Biases kept f32 as [1, E] VMEM blocks -> broadcast add in the f32 epilogue.
    bt2 = bt.reshape(1, E).astype(jnp.float32)
    bv2 = bv.reshape(1, E).astype(jnp.float32)

    # Batch-tile alignment: 8 rows per sublane group for 32-bit, 16 for bf16, 32 for 8-bit.
    itemsize = jnp.dtype(matmul_dtype).itemsize if matmul_dtype is not None else 4
    align = {4: 8, 2: 16, 1: 32}.get(itemsize, 8)

    tm = min(_round_up(block_b, align), _round_up(B, align))
    # Give v7x's two TensorCores at least two batch tiles when B allows it.
    if B >= 2 * align:
        tm = min(tm, _round_up(pl.cdiv(B, 2), align))
    grid = (pl.cdiv(B, tm),)

    # VMEM budget: single-buffered resident weights/biases + double-buffered
    # activation & output tiles (counted exactly once), clamped to physical VMEM.
    w_isz = jnp.dtype(wt.dtype).itemsize
    a_isz = jnp.dtype(text.dtype).itemsize
    o_isz = jnp.dtype(out_dtype).itemsize
    resident_bytes = (T + V) * E * w_isz + 2 * E * 4
    step_bytes = tm * (T + V) * a_isz + tm * E * o_isz
    vmem_needed = resident_bytes + 2 * step_bytes
    try:
        phys_vmem = int(pltpu.get_tpu_info().vmem_capacity_bytes)
    except Exception:
        phys_vmem = 64 * 1024 * 1024             # conservative: v7x per-TC size
    vmem_limit = int(min(max(vmem_needed + (4 << 20), 32 << 20), phys_vmem - (8 << 20)))

    cost = pl.CostEstimate(
        flops=int(2 * B * E * (T + V) + 3 * B * E),
        transcendentals=0,
        bytes_accessed=int(B * (T + V) * a_isz + (T + V) * E * w_isz
                           + 2 * E * 4 + B * E * o_isz),
    )

    def build(single_buffer_resident: bool):
        kw = {}
        if single_buffer_resident and hasattr(pl, "Buffered"):
            kw = dict(pipeline_mode=pl.Buffered(1))

        def resident(shape):
            return pl.BlockSpec(shape, lambda i: (0, 0), **kw)

        return pl.pallas_call(
            dot_product_kernel,
            out_shape=jax.ShapeDtypeStruct((B, E), out_dtype),
            grid=grid,
            in_specs=[
                pl.BlockSpec((tm, T), lambda i: (i, 0)),   # text tile, pipelined over B
                pl.BlockSpec((tm, V), lambda i: (i, 0)),   # vision tile, pipelined over B
                resident((T, E)),                          # wt: VMEM-resident
                resident((1, E)),                          # bt: VMEM-resident
                resident((V, E)),                          # wv: VMEM-resident
                resident((1, E)),                          # bv: VMEM-resident
            ],
            out_specs=pl.BlockSpec((tm, E), lambda i: (i, 0)),
            compiler_params=pltpu.CompilerParams(
                dimension_semantics=("parallel",),         # batch tiles across v7x TCs
                vmem_limit_bytes=vmem_limit,
            ),
            cost_estimate=cost,
        )

    args = (text, vision_flat, wt, bt2, wv, bv2)
    try:
        return build(True)(*args)
    except Exception:
        # pipeline_mode=pl.Buffered(1) unsupported in this JAX build -> default buffering.
        return build(False)(*args)


if __name__ == "__main__":
    # Small shapes consistent with the module's forward:
    #   embedding_size=128, text_size=32, vision NCHW = (B, 4, 4, 4) -> visual_size=64
    B, T, E = 8, 32, 128
    C, H, W = 4, 4, 4
    V = C * H * W

    key = jax.random.PRNGKey(0)
    k_text, k_vis, k_wt, k_bt, k_wv, k_bv = jax.random.split(key, 6)

    text = jax.random.normal(k_text, (B, T), dtype=jnp.float32)
    vision = jax.random.normal(k_vis, (B, C, H, W), dtype=jnp.float32)

    # Deterministic parameter init (nn.Linear shapes: weight [out, in], bias [out]).
    # Weights stored transposed ([in, out]) for row-major matmul in the kernel.
    wt = (jax.random.uniform(k_wt, (T, E), dtype=jnp.float32) - 0.5) * (2.0 / jnp.sqrt(T))
    bt = (jax.random.uniform(k_bt, (E,), dtype=jnp.float32) - 0.5) * (2.0 / jnp.sqrt(T))
    wv = (jax.random.uniform(k_wv, (V, E), dtype=jnp.float32) - 0.5) * (2.0 / jnp.sqrt(V))
    bv = (jax.random.uniform(k_bv, (E,), dtype=jnp.float32) - 0.5) * (2.0 / jnp.sqrt(V))

    # f32 end-to-end so the check against the f32 reference stays tight; pass
    # matmul_dtype=jnp.bfloat16 on v6e/v7x to halve the resident weight footprint.
    out = dot_product_forward(text, vision, wt, bt, wv, bv)
    out = jax.block_until_ready(out)

    # Reference in plain JAX (same math as the PyTorch forward).
    ref = (text @ wt + bt) * (vision.reshape(B, -1) @ wv + bv)
    assert out.shape == (B, E)
    assert jnp.allclose(out, ref, atol=1e-5, rtol=1e-5)

    print("KERNEL_OK")
</pallas_src>

<mosaic_0001>
module attributes {stable_mosaic.version = 11 : i64} {
  func.func @dot_product_kernel(%arg0: i32, %arg1: memref<8x32xf32, #tpu.memory_space<vmem>>, %arg2: memref<8x64xf32, #tpu.memory_space<vmem>>, %arg3: memref<32x128xf32, #tpu.memory_space<vmem>>, %arg4: memref<1x128xf32, #tpu.memory_space<vmem>>, %arg5: memref<64x128xf32, #tpu.memory_space<vmem>>, %arg6: memref<1x128xf32, #tpu.memory_space<vmem>>, %arg7: memref<8x128xf32, #tpu.memory_space<vmem>>) attributes {dimension_semantics = [#tpu.dimension_semantics<parallel>], iteration_bounds = array<i64: 1>, scalar_prefetch = 0 : i64, scratch_operands = 0 : i64, tpu.core_type = #tpu.core_type<tc>, window_params = [{transform_indices = @transform_0, window_bounds = array<i64: 8, 32>}, {transform_indices = @transform_1, window_bounds = array<i64: 8, 64>}, {pipeline_mode = #tpu.pipeline_mode<synchronous>, transform_indices = @transform_2, window_bounds = array<i64: 32, 128>}, {pipeline_mode = #tpu.pipeline_mode<synchronous>, transform_indices = @transform_3, window_bounds = array<i64: 1, 128>}, {pipeline_mode = #tpu.pipeline_mode<synchronous>, transform_indices = @transform_4, window_bounds = array<i64: 64, 128>}, {pipeline_mode = #tpu.pipeline_mode<synchronous>, transform_indices = @transform_5, window_bounds = array<i64: 1, 128>}, {transform_indices = @transform_6, window_bounds = array<i64: 8, 128>}]} {
    %c0 = arith.constant 0 : index
    %c0_0 = arith.constant 0 : index
    %0 = vector.load %arg1[%c0, %c0_0] : memref<8x32xf32, #tpu.memory_space<vmem>>, vector<8x32xf32>
    %c0_1 = arith.constant 0 : index
    %c0_2 = arith.constant 0 : index
    %1 = vector.load %arg2[%c0_1, %c0_2] : memref<8x64xf32, #tpu.memory_space<vmem>>, vector<8x64xf32>
    %c0_3 = arith.constant 0 : index
    %c0_4 = arith.constant 0 : index
    %2 = vector.load %arg3[%c0_3, %c0_4] : memref<32x128xf32, #tpu.memory_space<vmem>>, vector<32x128xf32>
    %cst = arith.constant dense<0.000000e+00> : vector<8x128xf32>
    %3 = tpu.matmul %0, %2, %cst {dimension_numbers = #tpu.dot_dimension_numbers<[1], [0], [0], [1], [0, 0, 1, 1], [], []>} : vector<8x32xf32>, vector<32x128xf32>, vector<8x128xf32> -> vector<8x128xf32>
    %c0_5 = arith.constant 0 : index
    %c0_6 = arith.constant 0 : index
    %4 = vector.load %arg4[%c0_5, %c0_6] : memref<1x128xf32, #tpu.memory_space<vmem>>, vector<1x128xf32>
    %5 = vector.broadcast %4 : vector<1x128xf32> to vector<8x128xf32>
    %6 = arith.addf %3, %5 : vector<8x128xf32>
    %c0_7 = arith.constant 0 : index
    %c0_8 = arith.constant 0 : index
    %7 = vector.load %arg5[%c0_7, %c0_8] : memref<64x128xf32, #tpu.memory_space<vmem>>, vector<64x128xf32>
    %cst_9 = arith.constant dense<0.000000e+00> : vector<8x128xf32>
    %8 = tpu.matmul %1, %7, %cst_9 {dimension_numbers = #tpu.dot_dimension_numbers<[1], [0], [0], [1], [0, 0, 1, 1], [], []>} : vector<8x64xf32>, vector<64x128xf32>, vector<8x128xf32> -> vector<8x128xf32>
    %c0_10 = arith.constant 0 : index
    %c0_11 = arith.constant 0 : index
    %9 = vector.load %arg6[%c0_10, %c0_11] : memref<1x128xf32, #tpu.memory_space<vmem>>, vector<1x128xf32>
    %10 = vector.broadcast %9 : vector<1x128xf32> to vector<8x128xf32>
    %11 = arith.addf %8, %10 : vector<8x128xf32>
    %12 = arith.mulf %6, %11 : vector<8x128xf32>
    %c0_12 = arith.constant 0 : index
    %c0_13 = arith.constant 0 : index
    %13 = vector.load %arg7[%c0_12, %c0_13] : memref<8x128xf32, #tpu.memory_space<vmem>>, vector<8x128xf32>
    tpu.vector_store %arg7[%c0_12, %c0_13], %12 {strides = array<i32>} : memref<8x128xf32, #tpu.memory_space<vmem>>, vector<8x128xf32>,
    return
  }
  func.func @transform_0(%arg0: i32) -> (i32, i32) {
    %c0_i32 = arith.constant 0 : i32
    %c0_i32_0 = arith.constant 0 : i32
    return %arg0, %c0_i32 : i32, i32
  }
  func.func @transform_1(%arg0: i32) -> (i32, i32) {
    %c0_i32 = arith.constant 0 : i32
    %c0_i32_0 = arith.constant 0 : i32
    return %arg0, %c0_i32 : i32, i32
  }
  func.func @transform_2(%arg0: i32) -> (i32, i32) {
    %c0_i32 = arith.constant 0 : i32
    %c0_i32_0 = arith.constant 0 : i32
    %c0_i32_1 = arith.constant 0 : i32
    return %c0_i32, %c0_i32_0 : i32, i32
  }
  func.func @transform_3(%arg0: i32) -> (i32, i32) {
    %c0_i32 = arith.constant 0 : i32
    %c0_i32_0 = arith.constant 0 : i32
    %c0_i32_1 = arith.constant 0 : i32
    return %c0_i32, %c0_i32_0 : i32, i32
  }
  func.func @transform_4(%arg0: i32) -> (i32, i32) {
    %c0_i32 = arith.constant 0 : i32
    %c0_i32_0 = arith.constant 0 : i32
    %c0_i32_1 = arith.constant 0 : i32
    return %c0_i32, %c0_i32_0 : i32, i32
  }
  func.func @transform_5(%arg0: i32) -> (i32, i32) {
    %c0_i32 = arith.constant 0 : i32
    %c0_i32_0 = arith.constant 0 : i32
    %c0_i32_1 = arith.constant 0 : i32
    return %c0_i32, %c0_i32_0 : i32, i32
  }
  func.func @transform_6(%arg0: i32) -> (i32, i32) {
    %c0_i32 = arith.constant 0 : i32
    %c0_i32_0 = arith.constant 0 : i32
    return %arg0, %c0_i32 : i32, i32
  }
}

module attributes {stable_mosaic.version = 11 : i64} {
  func.func @dot_product_kernel(%arg0: i32, %arg1: memref<8x32xf32, #tpu.memory_space<vmem>>, %arg2: memref<8x64xf32, #tpu.memory_space<vmem>>, %arg3: memref<32x128xf32, #tpu.memory_space<vmem>>, %arg4: memref<1x128xf32, #tpu.memory_space<vmem>>, %arg5: memref<64x128xf32, #tpu.memory_space<vmem>>, %arg6: memref<1x128xf32, #tpu.memory_space<vmem>>, %arg7: memref<8x128xf32, #tpu.memory_space<vmem>>) attributes {dimension_semantics = [#tpu.dimension_semantics<parallel>], iteration_bounds = array<i64: 1>, scalar_prefetch = 0 : i64, scratch_operands = 0 : i64, tpu.core_type = #tpu.core_type<tc>, window_params = [{transform_indices = @transform_0, window_bounds = array<i64: 8, 32>}, {transform_indices = @transform_1, window_bounds = array<i64: 8, 64>}, {pipeline_mode = #tpu.pipeline_mode<synchronous>, transform_indices = @transform_2, window_bounds = array<i64: 32, 128>}, {pipeline_mode = #tpu.pipeline_mode<synchronous>, transform_indices = @transform_3, window_bounds = array<i64: 1, 128>}, {pipeline_mode = #tpu.pipeline_mode<synchronous>, transform_indices = @transform_4, window_bounds = array<i64: 64, 128>}, {pipeline_mode = #tpu.pipeline_mode<synchronous>, transform_indices = @transform_5, window_bounds = array<i64: 1, 128>}, {transform_indices = @transform_6, window_bounds = array<i64: 8, 128>}]} {
    %c0 = arith.constant 0 : index
    %c0_0 = arith.constant 0 : index
    %0 = vector.load %arg1[%c0, %c0_0] : memref<8x32xf32, #tpu.memory_space<vmem>>, vector<8x32xf32>
    %c0_1 = arith.constant 0 : index
    %c0_2 = arith.constant 0 : index
    %1 = vector.load %arg2[%c0_1, %c0_2] : memref<8x64xf32, #tpu.memory_space<vmem>>, vector<8x64xf32>
    %c0_3 = arith.constant 0 : index
    %c0_4 = arith.constant 0 : index
    %2 = vector.load %arg3[%c0_3, %c0_4] : memref<32x128xf32, #tpu.memory_space<vmem>>, vector<32x128xf32>
    %cst = arith.constant dense<0.000000e+00> : vector<8x128xf32>
    %3 = tpu.matmul %0, %2, %cst {dimension_numbers = #tpu.dot_dimension_numbers<[1], [0], [0], [1], [0, 0, 1, 1], [], []>} : vector<8x32xf32>, vector<32x128xf32>, vector<8x128xf32> -> vector<8x128xf32>
    %c0_5 = arith.constant 0 : index
    %c0_6 = arith.constant 0 : index
    %4 = vector.load %arg4[%c0_5, %c0_6] : memref<1x128xf32, #tpu.memory_space<vmem>>, vector<1x128xf32>
    %5 = vector.broadcast %4 : vector<1x128xf32> to vector<8x128xf32>
    %6 = arith.addf %3, %5 : vector<8x128xf32>
    %c0_7 = arith.constant 0 : index
    %c0_8 = arith.constant 0 : index
    %7 = vector.load %arg5[%c0_7, %c0_8] : memref<64x128xf32, #tpu.memory_space<vmem>>, vector<64x128xf32>
    %cst_9 = arith.constant dense<0.000000e+00> : vector<8x128xf32>
    %8 = tpu.matmul %1, %7, %cst_9 {dimension_numbers = #tpu.dot_dimension_numbers<[1], [0], [0], [1], [0, 0, 1, 1], [], []>} : vector<8x64xf32>, vector<64x128xf32>, vector<8x128xf32> -> vector<8x128xf32>
    %c0_10 = arith.constant 0 : index
    %c0_11 = arith.constant 0 : index
    %9 = vector.load %arg6[%c0_10, %c0_11] : memref<1x128xf32, #tpu.memory_space<vmem>>, vector<1x128xf32>
    %10 = vector.broadcast %9 : vector<1x128xf32> to vector<8x128xf32>
    %11 = arith.addf %8, %10 : vector<8x128xf32>
    %12 = arith.mulf %6, %11 : vector<8x128xf32>
    %c0_12 = arith.constant 0 : index
    %c0_13 = arith.constant 0 : index
    %13 = vector.load %arg7[%c0_12, %c0_13] : memref<8x128xf32, #tpu.memory_space<vmem>>, vector<8x128xf32>
    tpu.vector_store %arg7[%c0_12, %c0_13], %12 {strides = array<i32>} : memref<8x128xf32, #tpu.memory_space<vmem>>, vector<8x128xf32>,
    return
  }
  func.func @transform_0(%arg0: i32) -> (i32, i32) {
    %c0_i32 = arith.constant 0 : i32
    %c0_i32_0 = arith.constant 0 : i32
    return %arg0, %c0_i32 : i32, i32
  }
  func.func @transform_1(%arg0: i32) -> (i32, i32) {
    %c0_i32 = arith.constant 0 : i32
    %c0_i32_0 = arith.constant 0 : i32
    return %arg0, %c0_i32 : i32, i32
  }
  func.func @transform_2(%arg0: i32) -> (i32, i32) {
    %c0_i32 = arith.constant 0 : i32
    %c0_i32_0 = arith.constant 0 : i32
    %c0_i32_1 = arith.constant 0 : i32
    return %c0_i32, %c0_i32_0 : i32, i32
  }
  func.func @transform_3(%arg0: i32) -> (i32, i32) {
    %c0_i32 = arith.constant 0 : i32
    %c0_i32_0 = arith.constant 0 : i32
    %c0_i32_1 = arith.constant 0 : i32
    return %c0_i32, %c0_i32_0 : i32, i32
  }
  func.func @transform_4(%arg0: i32) -> (i32, i32) {
    %c0_i32 = arith.constant 0 : i32
    %c0_i32_0 = arith.constant 0 : i32
    %c0_i32_1 = arith.constant 0 : i32
    return %c0_i32, %c0_i32_0 : i32, i32
  }
  func.func @transform_5(%arg0: i32) -> (i32, i32) {
    %c0_i32 = arith.constant 0 : i32
    %c0_i32_0 = arith.constant 0 : i32
    %c0_i32_1 = arith.constant 0 : i32
    return %c0_i32, %c0_i32_0 : i32, i32
  }
  func.func @transform_6(%arg0: i32) -> (i32, i32) {
    %c0_i32 = arith.constant 0 : i32
    %c0_i32_0 = arith.constant 0 : i32
    return %arg0, %c0_i32 : i32, i32
  }
}

</mosaic_0001>

<bundles_post_ra>
// kernel: tpu_custom_call.1
= control target key start
LH: loop header
LB: loop body
LE: loop exit
PB: predicated region body
PF: predicated region fallthrough
CT: control target
= control target key end

     0   :  { %11 = vsyncpa [#allocation3], 0  ;;  %s575_s0 = inlined_call_operand.hbm [shape: f32[8,32], index: 0, kind: input, shape index: {}]   ;;  %s576_s1 = inlined_call_operand.hbm [shape: f32[8,64], index: 1, kind: input, shape index: {}]   ;;  %s577_s2 = inlined_call_operand.hbm [shape: f32[32,128], index: 2, kind: input, shape index: {}]   ;;  %s578_s3 = inlined_call_operand.vmem [shape: f32[1,128], index: 3, kind: input, shape index: {}]   ;;  %s579_s4 = inlined_call_operand.hbm [shape: f32[64,128], index: 4, kind: input, shape index: {}]   ;;  %s580_s5 = inlined_call_operand.vmem [shape: f32[1,128], index: 5, kind: input, shape index: {}]   ;;  %s581_s6 = inlined_call_operand.hbm [shape: f32[8,128], index: 6, kind: output, shape index: {}]  }
   0x1   :  { %12 = vsyncpa [#allocation6], 0 }
   0x2   :  { %13 = vsyncpa [#allocation9], 0 }
   0x3   :  { %14 = vsyncpa [#allocation4], 0  ;;  %s464_s21 = smov [#allocation5]   ;;  %s465_s23 = smov [#allocation2]  }
   0x4   :  { %s31_s22 = sshll.u32 %s464_s21, 4  ;;  %s21_s24 = sshll.u32 %s465_s23, 4  ;;  %s32_s22 = int_to_ptr.vmem [resolvable:$true] %s31_s22  ;;  %s22_s24 = int_to_ptr.vmem [resolvable:$true] %s21_s24 }
   0x5   :  { %s346_s27 = scalar_lea.hbm %s576_s1, 128 }
   0x6   :  { %p347_p0 = scmp.ne.s32.totalorder %s576_s1, %s346_s27  ;;  %p350_p1 = scmp.lt.u32.totalorder %s346_s27, %s576_s1 }
   0x8   :  { %p352_p2 = pnand %p350_p1, %p347_p0 }
   0xa   :  { %355 = shalt.err (!%p352_p2)
}
   0xb   :  { %s356_s8 = scalar_lea.vmem %s32_s22, 128  ;;  %p361_p4 = scmp.lt.s32.totalorder %s32_s22, %s32_s22 }
   0xc   :  { %p357_p3 = scmp.ne.s32.totalorder %s32_s22, %s356_s8  ;;  %p362_p5 = scmp.lt.s32.totalorder %s356_s8, %s356_s8 }
   0xe   :  { %p363_p6 = por %p362_p5, %p361_p4 }
  0x10   :  { %p364_p7 = pnand %p363_p6, %p357_p3 }
  0x12   :  { %367 = shalt.err (!%p364_p7)
}
  0x13   :  { %34 = dma.hbm_to_vmem [thread:$0]  %s576_s1, 128, %s32_s22, [#allocation6]  }
  0x14   :  { %s368_s13 = scalar_lea.hbm %s575_s0, 128 }
  0x15   :  { %p369_p8 = scmp.ne.s32.totalorder %s575_s0, %s368_s13  ;;  %p372_p9 = scmp.lt.u32.totalorder %s368_s13, %s575_s0 }
  0x17   :  { %p374_p10 = pnand %p372_p9, %p369_p8 }
  0x19   :  { %377 = shalt.err (!%p374_p10)
}
  0x1a   :  { %s378_s18 = scalar_lea.vmem %s22_s24, 128  ;;  %p383_p12 = scmp.lt.s32.totalorder %s22_s24, %s22_s24 }
  0x1b   :  { %p379_p11 = scmp.ne.s32.totalorder %s22_s24, %s378_s18  ;;  %p384_p13 = scmp.lt.s32.totalorder %s378_s18, %s378_s18 }
  0x1d   :  { %p385_p0 = por %p384_p13, %p383_p12 }
  0x1f   :  { %p386_p1 = pnand %p385_p0, %p379_p11 }
  0x21   :  { %389 = shalt.err (!%p386_p1)
}
  0x22   :  { %24 = dma.hbm_to_vmem [thread:$0]  %s575_s0, 128, %s22_s24, [#allocation3]  }
  0x23   :  { %s466_s20 = smov [#allocation7]   ;;  %s390_s25 = scalar_lea.hbm %s577_s2, 512 }
  0x24   :  { %s40_s21 = sshll.u32 %s466_s20, 4  ;;  %p391_p2 = scmp.ne.s32.totalorder %s577_s2, %s390_s25  ;;  %s41_s21 = int_to_ptr.vmem [resolvable:$true] %s40_s21 }
  0x25   :  { %p394_p3 = scmp.lt.u32.totalorder %s390_s25, %s577_s2 }
  0x27   :  { %p396_p4 = pnand %p394_p3, %p391_p2 }
  0x29   :  { %399 = shalt.err (!%p396_p4)
}
  0x2a   :  { %s400_s30 = scalar_lea.vmem %s41_s21, 512  ;;  %p405_p6 = scmp.lt.s32.totalorder %s41_s21, %s41_s21 }
  0x2b   :  { %p401_p5 = scmp.ne.s32.totalorder %s41_s21, %s400_s30  ;;  %p406_p7 = scmp.lt.s32.totalorder %s400_s30, %s400_s30 }
  0x2d   :  { %p407_p8 = por %p406_p7, %p405_p6 }
  0x2f   :  { %p408_p9 = pnand %p407_p8, %p401_p5 }
  0x31   :  { %411 = shalt.err (!%p408_p9)
}
  0x32   :  { %s467_s0 = smov 128   ;;  %s468_s24 = smov 8  }
  0x33   :  { %46 = dma.hbm_to_vmem [thread:$0]  %s577_s2, 512, %s41_s21, [#allocation6], %s467_s0, %s467_s0, %s468_s24  }
  0x34   :  { %s469_s9 = smov [#allocation8]   ;;  %s412_s13 = scalar_lea.hbm %s579_s4, 1024 }
  0x35   :  { %s54_s10 = sshll.u32 %s469_s9, 4  ;;  %p413_p10 = scmp.ne.s32.totalorder %s579_s4, %s412_s13  ;;  %s55_s10 = int_to_ptr.vmem [resolvable:$true] %s54_s10 }
  0x36   :  { %p416_p11 = scmp.lt.u32.totalorder %s412_s13, %s579_s4 }
  0x38   :  { %p418_p12 = pnand %p416_p11, %p413_p10 }
  0x3a   :  { %421 = shalt.err (!%p418_p12)
}
  0x3b   :  { %s422_s18 = scalar_lea.vmem %s55_s10, 1024  ;;  %p427_p0 = scmp.lt.s32.totalorder %s55_s10, %s55_s10 }
  0x3c   :  { %p423_p13 = scmp.ne.s32.totalorder %s55_s10, %s422_s18  ;;  %p428_p1 = scmp.lt.s32.totalorder %s422_s18, %s422_s18 }
  0x3e   :  { %p429_p2 = por %p428_p1, %p427_p0 }
  0x40   :  { %p430_p3 = pnand %p429_p2, %p423_p13 }
  0x42   :  { %433 = shalt.err (!%p430_p3)
}
  0x43   :  { %60 = dma.hbm_to_vmem [thread:$0]  %s579_s4, 1024, %s55_s10, [#allocation9], %s467_s0, %s467_s0, %s468_s24  }
  0x44   :  { %456 = dma.done.wait [#allocation3], 128  }
  0x45   :  { %457 = vsyncadd [#allocation3], 4294967168 }
  0x46   :  { %458 = dma.done.wait [#allocation6], 640  }
  0x47   :  { %459 = vsyncadd [#allocation6], 4294966656 }
  0x48   :  { %460 = dma.done.wait [#allocation9], 1024  }
  0x49   :  { %461 = vsyncadd [#allocation9], 4294966272  ;;  %v470_v0 = vmov 0.0|0.0   ;;  %vm471_vm0 = vmmov 0   ;;  %v472_v1 = vmov 0.0   ;;  %v162_v2 = vld [vmem:[#allocation8] sm:$0xff] }
  0x4a   :  { %324 = vmatprep.subr.bf16.mxu1 %v470_v0  ;;  %318 = vmatprep.subr.bf16.mxu0 %v470_v0  ;;  %v163_v3 = vld [vmem:[#allocation8 + $0x8] sm:$0xff]  ;;  %v164_v4 = vld [vmem:[#allocation8 + $0x10] sm:$0xff]  ;;  %v165_v6 = vld [vmem:[#allocation8 + $0x18] sm:$0xff]  ;;  %vm88_vm1 = vcmask 261120   ;;  %vm177_vm2 = vcmask 523264   ;;  %s473_s22 = smov [#allocation10]  }
  0x4b   :  { %296 = vmatprep.mubr.msk.f32.mxu0 %vm471_vm0, %v472_v1  ;;  %315 = vmatprep.mubr.msk.f32.mxu1 %vm471_vm0, %v472_v1  ;;  %v325_v5 = vpack.c.bf16 %v163_v3, %v162_v2  ;;  %v77_v7 = vld [vmem:[#allocation7] sm:$0xff]  ;;  %v78_v8 = vld [vmem:[#allocation7 + $0x8] sm:$0xff]  ;;  %v79_v10 = vld [vmem:[#allocation7 + $0x10] sm:$0xff]  ;;  %v328_v11 = vpack.c.bf16 %v165_v6, %v164_v4  ;;  %s259_s23 = sshll.u32 %s473_s22, 4  ;;  %s260_s23 = int_to_ptr.vmem [resolvable:$true] %s259_s23 }
  0x4c   :  { %v319_v9 = vpack.c.bf16 %v78_v8, %v77_v7  ;;  %v80_v12 = vld [vmem:[#allocation7 + $0x18] sm:$0xff]  ;;  %v166_v13 = vld [vmem:[#allocation8 + $0x20] sm:$0xff]  ;;  %v167_v14 = vld [vmem:[#allocation8 + $0x28] sm:$0xff]  ;;  %s434_s25 = scalar_lea.vmem %s260_s23, 128  ;;  %p439_p5 = scmp.lt.s32.totalorder %s260_s23, %s260_s23 }
  0x4d   :  { %326 = vmatpush3.bf16.msra.mxu1 %v325_v5  ;;  %v322_v15 = vpack.c.bf16 %v80_v12, %v79_v10  ;;  %v331_v16 = vpack.c.bf16 %v167_v14, %v166_v13  ;;  %v168_v17 = vld [vmem:[#allocation8 + $0x30] sm:$0xff]  ;;  %v169_v18 = vld [vmem:[#allocation8 + $0x38] sm:$0xff]  ;;  %p435_p4 = scmp.ne.s32.totalorder %s260_s23, %s434_s25  ;;  %p440_p6 = scmp.lt.s32.totalorder %s434_s25, %s434_s25 }
  0x4e   :  { %327 = vmatprep.subr.bf16.mxu1 %v470_v0  ;;  %320 = vmatpush3.bf16.msra.mxu0 %v319_v9  ;;  %v75_v19 = vld [vmem:[#allocation2] sm:$0xff]  ;;  %v334_v20 = vpack.c.bf16 %v169_v18, %v168_v17  ;;  %v76_v21 = vld [vmem:[#allocation5] sm:$0xff] }
  0x4f   :  { %321 = vmatprep.subr.bf16.mxu0 %v470_v0  ;;  %v270_v24 = vld [vmem:[%s578_s3] ss:$0 sm:$0xff]  ;;  %p441_p7 = por %p440_p6, %p439_p5 }
  0x50   :  { %v272_v25 = vld [vmem:[%s580_s5] ss:$0 sm:$0xff] }
  0x51   :  { %329 = vmatpush3.bf16.msra.mxu1 %v328_v11  ;;  %p442_p8 = pnand %p441_p7, %p435_p4 }
  0x52   :  { %330 = vmatprep.subr.bf16.mxu1 %v470_v0  ;;  %323 = vmatpush3.bf16.msra.mxu0 %v322_v15 }
  0x55   :  { %332 = vmatpush3.bf16.msra.mxu1 %v331_v16  ;;  %297 = vmatmul.mubr.msk.f32.vlgmr.msra.gmra.mrb[0].mxu0 %vm88_vm1, %v75_v19 }
  0x56   :  { %333 = vmatprep.subr.bf16.mxu1 %v470_v0 }
  0x59   :  { %335 = vmatpush3.bf16.msra.mxu1 %v334_v20 }
  0x5c   :  { %316 = vmatmul.mubr.msk.f32.vlgmr.msra.gmra.mrb[0].mxu1 %vm177_vm2, %v76_v21 }
 0x128   :  { %v158_v22 = vpop.f32.mrb[0].mxu0 }
 0x129   :  { %v298_v23 = vpop.f32.mrb[1].mxu0  ;;  %v159_v26 = vadd.f32 %v270_v24, %v158_v22 }
 0x12f   :  { %v247_v27 = vpop.f32.mrb[0].mxu1 }
 0x130   :  { %v248_v28 = vadd.f32 %v272_v25, %v247_v27  ;;  %v317_v29 = vpop.f32.mrb[1].mxu1 }
 0x132   :  { %v251_v30 = vmul.f32 %v248_v28, %v159_v26 }
 0x134   :  { %252 = vst [vmem:[#allocation10] sm:$0xff] %v251_v30 }
 0x135   :  { %445 = shalt.err (!%p442_p8)
}
 0x136   :  { %s446_s5 = scalar_lea.hbm %s581_s6, 128 }
 0x137   :  { %p447_p9 = scmp.ne.s32.totalorder %s581_s6, %s446_s5  ;;  %p450_p10 = scmp.lt.u32.totalorder %s446_s5, %s581_s6 }
 0x139   :  { %p452_p11 = pnand %p450_p10, %p447_p9 }
 0x13b   :  { %455 = shalt.err (!%p452_p11)
}
 0x13c   :  { %262 = dma.vmem_to_hbm [thread:$0]  %s260_s23, 128, %s581_s6, [#allocation4]  }
 0x13d   :  { %462 = dma.done.wait [#allocation4], 128  }
 0x13e   :  { %463 = vsyncadd [#allocation4], 4294967168 }
 0x13f   :  { %266 = vsyncpa [#allocation3], 1 }
 0x140   :  { %267 = vsyncpa [#allocation6], 1 }
 0x141   :  { %268 = vsyncpa [#allocation9], 1 }
 0x142   :  { %269 = vsyncpa [#allocation4], 1 }

// kernel: tpu_custom_call.1
= control target key start
LH: loop header
LB: loop body
LE: loop exit
PB: predicated region body
PF: predicated region fallthrough
CT: control target
= control target key end

     0   :  { %11 = vsyncpa [#allocation3], 0  ;;  %s575_s0 = inlined_call_operand.hbm [shape: f32[8,32], index: 0, kind: input, shape index: {}]   ;;  %s576_s1 = inlined_call_operand.hbm [shape: f32[8,64], index: 1, kind: input, shape index: {}]   ;;  %s577_s2 = inlined_call_operand.hbm [shape: f32[32,128], index: 2, kind: input, shape index: {}]   ;;  %s578_s3 = inlined_call_operand.vmem [shape: f32[1,128], index: 3, kind: input, shape index: {}]   ;;  %s579_s4 = inlined_call_operand.hbm [shape: f32[64,128], index: 4, kind: input, shape index: {}]   ;;  %s580_s5 = inlined_call_operand.vmem [shape: f32[1,128], index: 5, kind: input, shape index: {}]   ;;  %s581_s6 = inlined_call_operand.hbm [shape: f32[8,128], index: 6, kind: output, shape index: {}]  }
   0x1   :  { %12 = vsyncpa [#allocation6], 0 }
   0x2   :  { %13 = vsyncpa [#allocation9], 0 }
   0x3   :  { %14 = vsyncpa [#allocation4], 0  ;;  %s464_s21 = smov [#allocation5]   ;;  %s465_s23 = smov [#allocation2]  }
   0x4   :  { %s31_s22 = sshll.u32 %s464_s21, 4  ;;  %s21_s24 = sshll.u32 %s465_s23, 4  ;;  %s32_s22 = int_to_ptr.vmem [resolvable:$true] %s31_s22  ;;  %s22_s24 = int_to_ptr.vmem [resolvable:$true] %s21_s24 }
   0x5   :  { %s346_s27 = scalar_lea.hbm %s576_s1, 128 }
   0x6   :  { %p347_p0 = scmp.ne.s32.totalorder %s576_s1, %s346_s27  ;;  %p350_p1 = scmp.lt.u32.totalorder %s346_s27, %s576_s1 }
   0x8   :  { %p352_p2 = pnand %p350_p1, %p347_p0 }
   0xa   :  { %355 = shalt.err (!%p352_p2)
}
   0xb   :  { %s356_s8 = scalar_lea.vmem %s32_s22, 128  ;;  %p361_p4 = scmp.lt.s32.totalorder %s32_s22, %s32_s22 }
   0xc   :  { %p357_p3 = scmp.ne.s32.totalorder %s32_s22, %s356_s8  ;;  %p362_p5 = scmp.lt.s32.totalorder %s356_s8, %s356_s8 }
   0xe   :  { %p363_p6 = por %p362_p5, %p361_p4 }
  0x10   :  { %p364_p7 = pnand %p363_p6, %p357_p3 }
  0x12   :  { %367 = shalt.err (!%p364_p7)
}
  0x13   :  { %34 = dma.hbm_to_vmem [thread:$0]  %s576_s1, 128, %s32_s22, [#allocation6]  }
  0x14   :  { %s368_s13 = scalar_lea.hbm %s575_s0, 128 }
  0x15   :  { %p369_p8 = scmp.ne.s32.totalorder %s575_s0, %s368_s13  ;;  %p372_p9 = scmp.lt.u32.totalorder %s368_s13, %s575_s0 }
  0x17   :  { %p374_p10 = pnand %p372_p9, %p369_p8 }
  0x19   :  { %377 = shalt.err (!%p374_p10)
}
  0x1a   :  { %s378_s18 = scalar_lea.vmem %s22_s24, 128  ;;  %p383_p12 = scmp.lt.s32.totalorder %s22_s24, %s22_s24 }
  0x1b   :  { %p379_p11 = scmp.ne.s32.totalorder %s22_s24, %s378_s18  ;;  %p384_p13 = scmp.lt.s32.totalorder %s378_s18, %s378_s18 }
  0x1d   :  { %p385_p0 = por %p384_p13, %p383_p12 }
  0x1f   :  { %p386_p1 = pnand %p385_p0, %p379_p11 }
  0x21   :  { %389 = shalt.err (!%p386_p1)
}
  0x22   :  { %24 = dma.hbm_to_vmem [thread:$0]  %s575_s0, 128, %s22_s24, [#allocation3]  }
  0x23   :  { %s466_s20 = smov [#allocation7]   ;;  %s390_s25 = scalar_lea.hbm %s577_s2, 512 }
  0x24   :  { %s40_s21 = sshll.u32 %s466_s20, 4  ;;  %p391_p2 = scmp.ne.s32.totalorder %s577_s2, %s390_s25  ;;  %s41_s21 = int_to_ptr.vmem [resolvable:$true] %s40_s21 }
  0x25   :  { %p394_p3 = scmp.lt.u32.totalorder %s390_s25, %s577_s2 }
  0x27   :  { %p396_p4 = pnand %p394_p3, %p391_p2 }
  0x29   :  { %399 = shalt.err (!%p396_p4)
}
  0x2a   :  { %s400_s30 = scalar_lea.vmem %s41_s21, 512  ;;  %p405_p6 = scmp.lt.s32.totalorder %s41_s21, %s41_s21 }
  0x2b   :  { %p401_p5 = scmp.ne.s32.totalorder %s41_s21, %s400_s30  ;;  %p406_p7 = scmp.lt.s32.totalorder %s400_s30, %s400_s30 }
  0x2d   :  { %p407_p8 = por %p406_p7, %p405_p6 }
  0x2f   :  { %p408_p9 = pnand %p407_p8, %p401_p5 }
  0x31   :  { %411 = shalt.err (!%p408_p9)
}
  0x32   :  { %s467_s0 = smov 128   ;;  %s468_s24 = smov 8  }
  0x33   :  { %46 = dma.hbm_to_vmem [thread:$0]  %s577_s2, 512, %s41_s21, [#allocation6], %s467_s0, %s467_s0, %s468_s24  }
  0x34   :  { %s469_s9 = smov [#allocation8]   ;;  %s412_s13 = scalar_lea.hbm %s579_s4, 1024 }
  0x35   :  { %s54_s10 = sshll.u32 %s469_s9, 4  ;;  %p413_p10 = scmp.ne.s32.totalorder %s579_s4, %s412_s13  ;;  %s55_s10 = int_to_ptr.vmem [resolvable:$true] %s54_s10 }
  0x36   :  { %p416_p11 = scmp.lt.u32.totalorder %s412_s13, %s579_s4 }
  0x38   :  { %p418_p12 = pnand %p416_p11, %p413_p10 }
  0x3a   :  { %421 = shalt.err (!%p418_p12)
}
  0x3b   :  { %s422_s18 = scalar_lea.vmem %s55_s10, 1024  ;;  %p427_p0 = scmp.lt.s32.totalorder %s55_s10, %s55_s10 }
  0x3c   :  { %p423_p13 = scmp.ne.s32.totalorder %s55_s10, %s422_s18  ;;  %p428_p1 = scmp.lt.s32.totalorder %s422_s18, %s422_s18 }
  0x3e   :  { %p429_p2 = por %p428_p1, %p427_p0 }
  0x40   :  { %p430_p3 = pnand %p429_p2, %p423_p13 }
  0x42   :  { %433 = shalt.err (!%p430_p3)
}
  0x43   :  { %60 = dma.hbm_to_vmem [thread:$0]  %s579_s4, 1024, %s55_s10, [#allocation9], %s467_s0, %s467_s0, %s468_s24  }
  0x44   :  { %456 = dma.done.wait [#allocation3], 128  }
  0x45   :  { %457 = vsyncadd [#allocation3], 4294967168 }
  0x46   :  { %458 = dma.done.wait [#allocation6], 640  }
  0x47   :  { %459 = vsyncadd [#allocation6], 4294966656 }
  0x48   :  { %460 = dma.done.wait [#allocation9], 1024  }
  0x49   :  { %461 = vsyncadd [#allocation9], 4294966272  ;;  %v470_v0 = vmov 0.0|0.0   ;;  %vm471_vm0 = vmmov 0   ;;  %v472_v1 = vmov 0.0   ;;  %v162_v2 = vld [vmem:[#allocation8] sm:$0xff] }
  0x4a   :  { %324 = vmatprep.subr.bf16.mxu1 %v470_v0  ;;  %318 = vmatprep.subr.bf16.mxu0 %v470_v0  ;;  %v163_v3 = vld [vmem:[#allocation8 + $0x8] sm:$0xff]  ;;  %v164_v4 = vld [vmem:[#allocation8 + $0x10] sm:$0xff]  ;;  %v165_v6 = vld [vmem:[#allocation8 + $0x18] sm:$0xff]  ;;  %vm88_vm1 = vcmask 261120   ;;  %vm177_vm2 = vcmask 523264   ;;  %s473_s22 = smov [#allocation10]  }
  0x4b   :  { %296 = vmatprep.mubr.msk.f32.mxu0 %vm471_vm0, %v472_v1  ;;  %315 = vmatprep.mubr.msk.f32.mxu1 %vm471_vm0, %v472_v1  ;;  %v325_v5 = vpack.c.bf16 %v163_v3, %v162_v2  ;;  %v77_v7 = vld [vmem:[#allocation7] sm:$0xff]  ;;  %v78_v8 = vld [vmem:[#allocation7 + $0x8] sm:$0xff]  ;;  %v79_v10 = vld [vmem:[#allocation7 + $0x10] sm:$0xff]  ;;  %v328_v11 = vpack.c.bf16 %v165_v6, %v164_v4  ;;  %s259_s23 = sshll.u32 %s473_s22, 4  ;;  %s260_s23 = int_to_ptr.vmem [resolvable:$true] %s259_s23 }
  0x4c   :  { %v319_v9 = vpack.c.bf16 %v78_v8, %v77_v7  ;;  %v80_v12 = vld [vmem:[#allocation7 + $0x18] sm:$0xff]  ;;  %v166_v13 = vld [vmem:[#allocation8 + $0x20] sm:$0xff]  ;;  %v167_v14 = vld [vmem:[#allocation8 + $0x28] sm:$0xff]  ;;  %s434_s25 = scalar_lea.vmem %s260_s23, 128  ;;  %p439_p5 = scmp.lt.s32.totalorder %s260_s23, %s260_s23 }
  0x4d   :  { %326 = vmatpush3.bf16.msra.mxu1 %v325_v5  ;;  %v322_v15 = vpack.c.bf16 %v80_v12, %v79_v10  ;;  %v331_v16 = vpack.c.bf16 %v167_v14, %v166_v13  ;;  %v168_v17 = vld [vmem:[#allocation8 + $0x30] sm:$0xff]  ;;  %v169_v18 = vld [vmem:[#allocation8 + $0x38] sm:$0xff]  ;;  %p435_p4 = scmp.ne.s32.totalorder %s260_s23, %s434_s25  ;;  %p440_p6 = scmp.lt.s32.totalorder %s434_s25, %s434_s25 }
  0x4e   :  { %327 = vmatprep.subr.bf16.mxu1 %v470_v0  ;;  %320 = vmatpush3.bf16.msra.mxu0 %v319_v9  ;;  %v75_v19 = vld [vmem:[#allocation2] sm:$0xff]  ;;  %v334_v20 = vpack.c.bf16 %v169_v18, %v168_v17  ;;  %v76_v21 = vld [vmem:[#allocation5] sm:$0xff] }
  0x4f   :  { %321 = vmatprep.subr.bf16.mxu0 %v470_v0  ;;  %v270_v24 = vld [vmem:[%s578_s3] ss:$0 sm:$0xff]  ;;  %p441_p7 = por %p440_p6, %p439_p5 }
  0x50   :  { %v272_v25 = vld [vmem:[%s580_s5] ss:$0 sm:$0xff] }
  0x51   :  { %329 = vmatpush3.bf16.msra.mxu1 %v328_v11  ;;  %p442_p8 = pnand %p441_p7, %p435_p4 }
  0x52   :  { %330 = vmatprep.subr.bf16.mxu1 %v470_v0  ;;  %323 = vmatpush3.bf16.msra.mxu0 %v322_v15 }
  0x55   :  { %332 = vmatpush3.bf16.msra.mxu1 %v331_v16  ;;  %297 = vmatmul.mubr.msk.f32.vlgmr.msra.gmra.mrb[0].mxu0 %vm88_vm1, %v75_v19 }
  0x56   :  { %333 = vmatprep.subr.bf16.mxu1 %v470_v0 }
  0x59   :  { %335 = vmatpush3.bf16.msra.mxu1 %v334_v20 }
  0x5c   :  { %316 = vmatmul.mubr.msk.f32.vlgmr.msra.gmra.mrb[0].mxu1 %vm177_vm2, %v76_v21 }
 0x128   :  { %v158_v22 = vpop.f32.mrb[0].mxu0 }
 0x129   :  { %v298_v23 = vpop.f32.mrb[1].mxu0  ;;  %v159_v26 = vadd.f32 %v270_v24, %v158_v22 }
 0x12f   :  { %v247_v27 = vpop.f32.mrb[0].mxu1 }
 0x130   :  { %v248_v28 = vadd.f32 %v272_v25, %v247_v27  ;;  %v317_v29 = vpop.f32.mrb[1].mxu1 }
 0x132   :  { %v251_v30 = vmul.f32 %v248_v28, %v159_v26 }
 0x134   :  { %252 = vst [vmem:[#allocation10] sm:$0xff] %v251_v30 }
 0x135   :  { %445 = shalt.err (!%p442_p8)
}
 0x136   :  { %s446_s5 = scalar_lea.hbm %s581_s6, 128 }
 0x137   :  { %p447_p9 = scmp.ne.s32.totalorder %s581_s6, %s446_s5  ;;  %p450_p10 = scmp.lt.u32.totalorder %s446_s5, %s581_s6 }
 0x139   :  { %p452_p11 = pnand %p450_p10, %p447_p9 }
 0x13b   :  { %455 = shalt.err (!%p452_p11)
}
 0x13c   :  { %262 = dma.vmem_to_hbm [thread:$0]  %s260_s23, 128, %s581_s6, [#allocation4]  }
 0x13d   :  { %462 = dma.done.wait [#allocation4], 128  }
 0x13e   :  { %463 = vsyncadd [#allocation4], 4294967168 }
 0x13f   :  { %266 = vsyncpa [#allocation3], 1 }
 0x140   :  { %267 = vsyncpa [#allocation6], 1 }
 0x141   :  { %268 = vsyncpa [#allocation9], 1 }
 0x142   :  { %269 = vsyncpa [#allocation4], 1 }

</bundles_post_ra>
